<compile_context>
chip_gen: v5e
topology: v5e:2x2
jax: 0.10.0
libtpu: 0.0.40
codegen_flags: <defaults>
</compile_context>

<pallas_src>
import functools
import math

import numpy as np

import jax
import jax.numpy as jnp
from jax.experimental import pallas as pl
from jax.experimental.pallas import tpu as pltpu


def _round_up(x, m):
    return (x + m - 1) // m * m


def _pick_vmem_limit_bytes():
    cap = 64 * 1024 * 1024            # conservative default = v7x physical VMEM
    try:
        cap = int(pltpu.get_tpu_info().vmem_capacity_bytes)
    except Exception:
        pass
    # Leave headroom for internal scratch (the tn x te one-hot intermediate,
    # spills, double buffers): ~40 MiB on v7x, ~96 MiB on v5e/v6e.
    return max(32 * 1024 * 1024, min(96 * 1024 * 1024, cap - 24 * 1024 * 1024))


# ---------------------------------------------------------------------------
# Fused kernel: scatter-mean of in-edge features + split-weight linear layer
# ---------------------------------------------------------------------------
def _egraph_conv_kernel(dst_ref, ef_ref, h_ref, inv_deg_ref, wh_ref, we_ref,
                        out_ref, acc_ref, *, edge_tile, edges_resident,
                        agg_dtype):
    e_idx = pl.program_id(1)
    tn = acc_ref.shape[0]
    te = edge_tile

    @pl.when(e_idx == 0)
    def _init():
        acc_ref[...] = jnp.zeros_like(acc_ref)

    # Current edge chunk: resident mode slices the VMEM-resident full edge
    # array (fetched once for the whole grid); streamed mode gets exactly one
    # (te, es_pad) tile per step.
    if edges_resident:
        start = pl.multiple_of(e_idx * te, 128)
        ef = ef_ref[pl.ds(start, te), :]
    else:
        ef = ef_ref[...]
    dst = dst_ref[...]                                           # (1, te) int32

    # Scatter-sum this edge chunk into the node-row accumulator.  The one-hot
    # incidence tile is rebuilt on the fly (iota compare on the VPU, ~1/128 of
    # the MXU MACs -> hidden under the matmul); never materialized in HBM.
    node_base = pl.program_id(0) * tn
    row_ids = node_base + jax.lax.broadcasted_iota(jnp.int32, (tn, te), 0)
    onehot = (row_ids == dst).astype(agg_dtype)                  # exact in bf16
    acc_ref[...] += jnp.dot(onehot, ef.astype(agg_dtype),
                            preferred_element_type=jnp.float32)

    # Finalize on the last edge chunk: mean (empty neighborhood -> 0 via the
    # precomputed inv_deg), then the fused split-weight linear layer with a
    # lane-dense (h_pad multiple of 128) store.
    @pl.when(e_idx == pl.num_programs(1) - 1)
    def _finalize():
        mean = acc_ref[...] * inv_deg_ref[...]                   # (tn, es_pad)
        y = jnp.dot(h_ref[...].astype(wh_ref.dtype), wh_ref[...],
                    preferred_element_type=jnp.float32)
        y = y + jnp.dot(mean.astype(we_ref.dtype), we_ref[...],
                        preferred_element_type=jnp.float32)
        out_ref[...] = y.astype(out_ref.dtype)


def egraph_conv_forward(dst, edge_feat, node_feat, wh_t, we_t, *, h_size,
                        node_tile=512, edge_tile=2048,
                        agg_dtype=jnp.bfloat16, edges_resident=None,
                        vmem_limit_bytes=None):
    """EGraphCONV forward (similarity_func=None). Returns [N, h_size] float32.

    wh_t: [in_pad, h_pad] lane-padded W[:, :in_size].T
    we_t: [es_pad, h_pad] lane-padded W[:, in_size:].T
    """
    N, in_size = node_feat.shape
    E, e_size = edge_feat.shape
    in_pad, h_pad = wh_t.shape
    es_pad = we_t.shape[0]

    if vmem_limit_bytes is None:
        vmem_limit_bytes = _pick_vmem_limit_bytes()

    # --- tile sizing -------------------------------------------------------
    # Node tiles: sublane-aligned; aim for >=2 tiles so v7x's two TensorCores
    # both get work on the "parallel" axis.
    tn = _round_up(min(node_tile, max(-(-N // 2), 1)), 8)
    n_pad = _round_up(N, tn)
    # Edge chunks: lane-aligned.
    te = _round_up(min(edge_tile, E), 128)
    e_pad = _round_up(E, te)

    # Keep the whole (padded, agg_dtype) edge-feature array VMEM-resident when
    # it comfortably fits; otherwise fall back to streaming it per node tile.
    ef_bytes = e_pad * es_pad * np.dtype(agg_dtype).itemsize
    if edges_resident is None:
        edges_resident = 2 * ef_bytes <= vmem_limit_bytes // 3

    # --- operand prep (pad + cast; fused into the jitted forward) -----------
    dst = dst.astype(jnp.int32)
    # Padded edges get dst = -1 so they match no node row.
    dst_p = jnp.full((1, e_pad), -1, jnp.int32).at[0, :E].set(dst)
    # Edge features pre-cast to agg_dtype (bf16 by default) so the scatter
    # matmul runs the bf16 MXU path (a mixed bf16 x f32 dot would promote
    # back to f32 and lose the speedup).  Accumulation stays f32.
    ef_p = jnp.zeros((e_pad, es_pad), agg_dtype).at[:E, :e_size].set(
        edge_feat.astype(agg_dtype))
    h_p = jnp.zeros((n_pad, in_pad), wh_t.dtype).at[:N, :in_size].set(
        node_feat.astype(wh_t.dtype))

    # In-degree reciprocal computed once (empty neighborhood -> 0); finalize
    # is then a single multiply (no divide / select in the kernel).
    deg = jnp.zeros((N,), jnp.float32).at[dst].add(1.0)
    inv_deg = jnp.where(deg > 0.0, 1.0 / jnp.maximum(deg, 1.0), 0.0)
    inv_deg_p = jnp.zeros((n_pad, 1), jnp.float32).at[:N, 0].set(inv_deg)

    kernel = functools.partial(_egraph_conv_kernel, edge_tile=te,
                               edges_resident=edges_resident,
                               agg_dtype=agg_dtype)
    grid = (n_pad // tn, e_pad // te)     # (node tiles, edge-reduction chunks)

    ef_spec = (pl.BlockSpec((e_pad, es_pad), lambda i, e: (0, 0))   # resident
               if edges_resident else
               pl.BlockSpec((te, es_pad), lambda i, e: (e, 0)))     # streamed

    out = pl.pallas_call(
        kernel,
        out_shape=jax.ShapeDtypeStruct((n_pad, h_pad), jnp.float32),
        grid_spec=pltpu.PrefetchScalarGridSpec(
            num_scalar_prefetch=0,
            grid=grid,
            in_specs=[
                pl.BlockSpec((1, te), lambda i, e: (0, e)),           # dst ids
                ef_spec,                                              # edge feats
                pl.BlockSpec((tn, in_pad), lambda i, e: (i, 0)),      # node feats
                pl.BlockSpec((tn, 1), lambda i, e: (i, 0)),           # 1/deg
                pl.BlockSpec((in_pad, h_pad), lambda i, e: (0, 0)),   # Wh^T
                pl.BlockSpec((es_pad, h_pad), lambda i, e: (0, 0)),   # We^T
            ],
            out_specs=pl.BlockSpec((tn, h_pad), lambda i, e: (i, 0)),
            scratch_shapes=[pltpu.VMEM((tn, es_pad), jnp.float32)],
        ),
        compiler_params=pltpu.CompilerParams(
            dimension_semantics=("parallel", "arbitrary"),
            vmem_limit_bytes=vmem_limit_bytes,
        ),
    )(dst_p, ef_p, h_p, inv_deg_p, wh_t, we_t)

    return out[:N, :h_size]


# ---------------------------------------------------------------------------
# EGraphCONV module (similarity_func=None path)
# ---------------------------------------------------------------------------
class EGraphCONVPallas:
    def __init__(self, in_size, e_size, h_size, key, num_edges=-1,
                 similarity_threshold=0.5, similarity_func=None,
                 agg_dtype=jnp.bfloat16, weight_dtype=jnp.float32,
                 node_tile=512, edge_tile=2048):
        if similarity_func is not None:
            # TODO(synk): similarity_func != None branch (data-dependent
            # per-edge similarity gating loop) is not implemented; only the
            # default (None) semantics are reproduced.
            raise NotImplementedError("similarity_func != None is not supported")
        self.in_size = in_size
        self.e_size = e_size
        self.h_size = h_size
        self.num_edges = num_edges
        self.similarity_threshold = similarity_threshold

        # kaiming_uniform_ with a=sqrt(0.5): bound = sqrt(2/(1+a^2))*sqrt(3/fan_in)
        fan_in = in_size + e_size
        gain = math.sqrt(2.0 / (1.0 + 0.5))
        bound = gain * math.sqrt(3.0 / fan_in)
        self.weight = jax.random.uniform(key, (h_size, fan_in), jnp.float32,
                                         minval=-bound, maxval=bound)

        # Split + transpose + lane-pad the weight once at init:
        #   concat(h, agg) @ W.T == h @ Wh.T + agg @ We.T
        in_pad = _round_up(in_size, 128)
        es_pad = _round_up(e_size, 128)
        h_pad = _round_up(h_size, 128)
        wt = self.weight.T                                     # [fan_in, h_size]
        wh = jnp.zeros((in_pad, h_pad), jnp.float32).at[:in_size, :h_size].set(
            wt[:in_size])
        we = jnp.zeros((es_pad, h_pad), jnp.float32).at[:e_size, :h_size].set(
            wt[in_size:])
        # weight_dtype=bf16 hits the bf16 MXU path for the finalize matmuls on
        # v5e/v6e/v7x; f32 default keeps full output precision.
        self.wh_t = wh.astype(weight_dtype)
        self.we_t = we.astype(weight_dtype)

        # jit the whole forward so per-call padding / casts / the O(E) degree
        # scatter fuse with the kernel call instead of running as eager ops.
        self._forward = jax.jit(functools.partial(
            egraph_conv_forward, h_size=h_size, node_tile=node_tile,
            edge_tile=edge_tile, agg_dtype=agg_dtype))

    def __call__(self, dst, edge_feat, node_feat):
        # dst[e] = destination node of edge e (aggregation over *in*-edges,
        # matching dgl.sampling.sample_neighbors' default edge_dir='in').
        return self._forward(dst, edge_feat, node_feat, self.wh_t, self.we_t)


# ---------------------------------------------------------------------------
# Pure-JAX reference for correctness checks
# ---------------------------------------------------------------------------
def _reference(weight, dst, edge_feat, node_feat):
    N = node_feat.shape[0]
    inc = (dst[None, :] == jnp.arange(N)[:, None]).astype(jnp.float32)
    deg = inc.sum(axis=1, keepdims=True)
    agg = jnp.where(deg > 0, (inc @ edge_feat) / jnp.maximum(deg, 1.0), 0.0)
    x = jnp.concatenate([node_feat, agg], axis=1)
    return x @ weight.T


if __name__ == "__main__":
    key = jax.random.PRNGKey(0)
    k_dst, k_ef, k_nf, k_w, k2 = jax.random.split(key, 5)

    # --- small test (single grid step), default bf16 aggregation path ---
    N, E, IN, ES, HS = 8, 16, 16, 8, 32
    dst = jax.random.randint(k_dst, (E,), 0, N, dtype=jnp.int32)
    edge_feat = jax.random.normal(k_ef, (E, ES), dtype=jnp.float32)
    node_feat = jax.random.normal(k_nf, (N, IN), dtype=jnp.float32)

    layer = EGraphCONVPallas(IN, ES, HS, k_w)              # bf16 agg (default)
    out = jax.block_until_ready(layer(dst, edge_feat, node_feat))
    ref = _reference(layer.weight, dst, edge_feat, node_feat)
    assert out.shape == (N, HS), out.shape
    assert jnp.allclose(out, ref, atol=5e-2, rtol=5e-2), float(jnp.abs(out - ref).max())

    # exact f32 aggregation path (same key -> same weights)
    layer_f32 = EGraphCONVPallas(IN, ES, HS, k_w, agg_dtype=jnp.float32)
    out_f = jax.block_until_ready(layer_f32(dst, edge_feat, node_feat))
    assert jnp.allclose(out_f, ref, atol=1e-4, rtol=1e-4), float(jnp.abs(out_f - ref).max())

    # --- multi-tile test: 2 node tiles x 5 edge-reduction chunks, plus an
    #     isolated node (exercises accumulator + inv_deg finalize) ---
    k_dst2, k_ef2, k_nf2, k_w2 = jax.random.split(k2, 4)
    N2, E2 = 272, 1050
    dst2 = jax.random.randint(k_dst2, (E2,), 0, N2 - 1, dtype=jnp.int32)  # node N2-1 isolated
    ef2 = jax.random.normal(k_ef2, (E2, ES), dtype=jnp.float32)
    nf2 = jax.random.normal(k_nf2, (N2, IN), dtype=jnp.float32)
    layer2 = EGraphCONVPallas(IN, ES, HS, k_w2, agg_dtype=jnp.float32,
                              edge_tile=256)
    out2 = jax.block_until_ready(layer2(dst2, ef2, nf2))
    ref2 = _reference(layer2.weight, dst2, ef2, nf2)
    assert out2.shape == (N2, HS), out2.shape
    assert jnp.allclose(out2, ref2, atol=1e-4, rtol=1e-4), float(jnp.abs(out2 - ref2).max())

    # --- streamed (non-resident) fallback path, same graph ---
    out2s = jax.block_until_ready(egraph_conv_forward(
        dst2, ef2, nf2, layer2.wh_t, layer2.we_t, h_size=HS,
        edge_tile=256, agg_dtype=jnp.float32, edges_resident=False))
    assert jnp.allclose(out2s, ref2, atol=1e-4, rtol=1e-4), float(jnp.abs(out2s - ref2).max())

    print("KERNEL_OK")
</pallas_src>

<mosaic_0001>
module attributes {stable_mosaic.version = 11 : i64} {
  func.func @_egraph_conv_kernel(%arg0: i32, %arg1: i32, %arg2: memref<1x128xi32, #tpu.memory_space<vmem>>, %arg3: memref<128x128xbf16, #tpu.memory_space<vmem>>, %arg4: memref<8x128xf32, #tpu.memory_space<vmem>>, %arg5: memref<8x1xf32, #tpu.memory_space<vmem>>, %arg6: memref<128x128xf32, #tpu.memory_space<vmem>>, %arg7: memref<128x128xf32, #tpu.memory_space<vmem>>, %arg8: memref<8x128xf32, #tpu.memory_space<vmem>>, %arg9: memref<8x128xf32, #tpu.memory_space<vmem>>) attributes {dimension_semantics = [#tpu.dimension_semantics<parallel>, #tpu.dimension_semantics<arbitrary>], iteration_bounds = array<i64: 1, 1>, scalar_prefetch = 0 : i64, scratch_operands = 1 : i64, tpu.core_type = #tpu.core_type<tc>, window_params = [{transform_indices = @transform_0, window_bounds = array<i64: 1, 128>}, {pipeline_mode = #tpu.pipeline_mode<synchronous>, transform_indices = @transform_1, window_bounds = array<i64: 128, 128>}, {transform_indices = @transform_2, window_bounds = array<i64: 8, 128>}, {transform_indices = @transform_3, window_bounds = array<i64: 8, 1>}, {pipeline_mode = #tpu.pipeline_mode<synchronous>, transform_indices = @transform_4, window_bounds = array<i64: 128, 128>}, {pipeline_mode = #tpu.pipeline_mode<synchronous>, transform_indices = @transform_5, window_bounds = array<i64: 128, 128>}, {transform_indices = @transform_6, window_bounds = array<i64: 8, 128>}]} {
    %c0_i32 = arith.constant 0 : i32
    %0 = arith.cmpi eq, %arg1, %c0_i32 : i32
    %1 = arith.extui %0 : i1 to i32
    %c0_i32_0 = arith.constant 0 : i32
    %2 = arith.cmpi ne, %1, %c0_i32_0 : i32
    scf.if %2 {
      %cst_9 = arith.constant 0.000000e+00 : f32
      %24 = vector.broadcast %cst_9 : f32 to vector<8x128xf32>
      %c0_10 = arith.constant 0 : index
      %c0_11 = arith.constant 0 : index
      %25 = vector.load %arg9[%c0_10, %c0_11] : memref<8x128xf32, #tpu.memory_space<vmem>>, vector<8x128xf32>
      tpu.vector_store %arg9[%c0_10, %c0_11], %24 {strides = array<i32>} : memref<8x128xf32, #tpu.memory_space<vmem>>, vector<8x128xf32>,
    } else {
    }
    %c128_i32 = arith.constant 128 : i32
    %3 = arith.muli %arg1, %c128_i32 : i32
    %4 = tpu.assume_multiple %3, 128 : i32
    %5 = arith.index_cast %4 : i32 to index
    %c0 = arith.constant 0 : index
    %6 = vector.load %arg3[%5, %c0] : memref<128x128xbf16, #tpu.memory_space<vmem>>, vector<128x128xbf16>
    %c0_1 = arith.constant 0 : index
    %c0_2 = arith.constant 0 : index
    %7 = vector.load %arg2[%c0_1, %c0_2] : memref<1x128xi32, #tpu.memory_space<vmem>>, vector<1x128xi32>
    %c8_i32 = arith.constant 8 : i32
    %8 = arith.muli %arg0, %c8_i32 : i32
    %9 = tpu.iota {dimensions = array<i32: 0>} : vector<8x128xi32>
    %10 = vector.broadcast %8 : i32 to vector<8x128xi32>
    %11 = arith.addi %10, %9 : vector<8x128xi32>
    %12 = vector.broadcast %7 : vector<1x128xi32> to vector<8x128xi32>
    %13 = arith.cmpi eq, %11, %12 : vector<8x128xi32>
    %14 = arith.extui %13 : vector<8x128xi1> to vector<8x128xi32>
    %15 = arith.sitofp %14 : vector<8x128xi32> to vector<8x128xf32>
    %16 = arith.truncf %15 : vector<8x128xf32> to vector<8x128xbf16>
    %c0_3 = arith.constant 0 : index
    %c0_4 = arith.constant 0 : index
    %17 = vector.load %arg9[%c0_3, %c0_4] : memref<8x128xf32, #tpu.memory_space<vmem>>, vector<8x128xf32>
    %cst = arith.constant dense<0.000000e+00> : vector<8x128xf32>
    %18 = tpu.matmul %16, %6, %cst {dimension_numbers = #tpu.dot_dimension_numbers<[1], [0], [0], [1], [0, 0, 1, 1], [], []>} : vector<8x128xbf16>, vector<128x128xbf16>, vector<8x128xf32> -> vector<8x128xf32>
    %19 = arith.addf %17, %18 : vector<8x128xf32>
    %c0_5 = arith.constant 0 : index
    %c0_6 = arith.constant 0 : index
    %20 = vector.load %arg9[%c0_5, %c0_6] : memref<8x128xf32, #tpu.memory_space<vmem>>, vector<8x128xf32>
    tpu.vector_store %arg9[%c0_5, %c0_6], %19 {strides = array<i32>} : memref<8x128xf32, #tpu.memory_space<vmem>>, vector<8x128xf32>,
    %c0_i32_7 = arith.constant 0 : i32
    %21 = arith.cmpi eq, %arg1, %c0_i32_7 : i32
    %22 = arith.extui %21 : i1 to i32
    %c0_i32_8 = arith.constant 0 : i32
    %23 = arith.cmpi ne, %22, %c0_i32_8 : i32
    scf.if %23 {
      %c0_9 = arith.constant 0 : index
      %c0_10 = arith.constant 0 : index
      %24 = vector.load %arg9[%c0_9, %c0_10] : memref<8x128xf32, #tpu.memory_space<vmem>>, vector<8x128xf32>
      %c0_11 = arith.constant 0 : index
      %c0_12 = arith.constant 0 : index
      %25 = vector.load %arg5[%c0_11, %c0_12] : memref<8x1xf32, #tpu.memory_space<vmem>>, vector<8x1xf32>
      %26 = vector.broadcast %25 : vector<8x1xf32> to vector<8x128xf32>
      %27 = arith.mulf %24, %26 : vector<8x128xf32>
      %c0_13 = arith.constant 0 : index
      %c0_14 = arith.constant 0 : index
      %28 = vector.load %arg4[%c0_13, %c0_14] : memref<8x128xf32, #tpu.memory_space<vmem>>, vector<8x128xf32>
      %c0_15 = arith.constant 0 : index
      %c0_16 = arith.constant 0 : index
      %29 = vector.load %arg6[%c0_15, %c0_16] : memref<128x128xf32, #tpu.memory_space<vmem>>, vector<128x128xf32>
      %cst_17 = arith.constant dense<0.000000e+00> : vector<8x128xf32>
      %30 = tpu.matmul %28, %29, %cst_17 {dimension_numbers = #tpu.dot_dimension_numbers<[1], [0], [0], [1], [0, 0, 1, 1], [], []>} : vector<8x128xf32>, vector<128x128xf32>, vector<8x128xf32> -> vector<8x128xf32>
      %c0_18 = arith.constant 0 : index
      %c0_19 = arith.constant 0 : index
      %31 = vector.load %arg7[%c0_18, %c0_19] : memref<128x128xf32, #tpu.memory_space<vmem>>, vector<128x128xf32>
      %cst_20 = arith.constant dense<0.000000e+00> : vector<8x128xf32>
      %32 = tpu.matmul %27, %31, %cst_20 {dimension_numbers = #tpu.dot_dimension_numbers<[1], [0], [0], [1], [0, 0, 1, 1], [], []>} : vector<8x128xf32>, vector<128x128xf32>, vector<8x128xf32> -> vector<8x128xf32>
      %33 = arith.addf %30, %32 : vector<8x128xf32>
      %c0_21 = arith.constant 0 : index
      %c0_22 = arith.constant 0 : index
      %34 = vector.load %arg8[%c0_21, %c0_22] : memref<8x128xf32, #tpu.memory_space<vmem>>, vector<8x128xf32>
      tpu.vector_store %arg8[%c0_21, %c0_22], %33 {strides = array<i32>} : memref<8x128xf32, #tpu.memory_space<vmem>>, vector<8x128xf32>,
    } else {
    }
    return
  }
  func.func @transform_0(%arg0: i32, %arg1: i32) -> (i32, i32) {
    %c0_i32 = arith.constant 0 : i32
    %c0_i32_0 = arith.constant 0 : i32
    return %c0_i32, %arg1 : i32, i32
  }
  func.func @transform_1(%arg0: i32, %arg1: i32) -> (i32, i32) {
    %c0_i32 = arith.constant 0 : i32
    %c0_i32_0 = arith.constant 0 : i32
    %c0_i32_1 = arith.constant 0 : i32
    return %c0_i32, %c0_i32_0 : i32, i32
  }
  func.func @transform_2(%arg0: i32, %arg1: i32) -> (i32, i32) {
    %c0_i32 = arith.constant 0 : i32
    %c0_i32_0 = arith.constant 0 : i32
    return %arg0, %c0_i32 : i32, i32
  }
  func.func @transform_3(%arg0: i32, %arg1: i32) -> (i32, i32) {
    %c0_i32 = arith.constant 0 : i32
    %c0_i32_0 = arith.constant 0 : i32
    return %arg0, %c0_i32 : i32, i32
  }
  func.func @transform_4(%arg0: i32, %arg1: i32) -> (i32, i32) {
    %c0_i32 = arith.constant 0 : i32
    %c0_i32_0 = arith.constant 0 : i32
    %c0_i32_1 = arith.constant 0 : i32
    return %c0_i32, %c0_i32_0 : i32, i32
  }
  func.func @transform_5(%arg0: i32, %arg1: i32) -> (i32, i32) {
    %c0_i32 = arith.constant 0 : i32
    %c0_i32_0 = arith.constant 0 : i32
    %c0_i32_1 = arith.constant 0 : i32
    return %c0_i32, %c0_i32_0 : i32, i32
  }
  func.func @transform_6(%arg0: i32, %arg1: i32) -> (i32, i32) {
    %c0_i32 = arith.constant 0 : i32
    %c0_i32_0 = arith.constant 0 : i32
    return %arg0, %c0_i32 : i32, i32
  }
}

</mosaic_0001>

<bundles_post_ra>
// kernel: egraph_conv_forward.1
= control target key start
LH: loop header
LB: loop body
LE: loop exit
PB: predicated region body
PF: predicated region fallthrough
CT: control target
= control target key end

     0   :  { %11 = vsyncpa [#allocation4], 0  ;;  %s476_s0 = inlined_call_operand.vmem [shape: s32[1,128], index: 0, kind: input, shape index: {}]   ;;  %s477_s1 = inlined_call_operand.vmem [shape: bf16[128,128], index: 1, kind: input, shape index: {}]   ;;  %s478_s2 = inlined_call_operand.vmem [shape: f32[8,128], index: 2, kind: input, shape index: {}]   ;;  %s479_s3 = inlined_call_operand.vmem [shape: f32[8,1], index: 3, kind: input, shape index: {}]   ;;  %s480_s4 = inlined_call_operand.hbm [shape: f32[128,128], index: 4, kind: input, shape index: {}]   ;;  %s481_s5 = inlined_call_operand.hbm [shape: f32[128,128], index: 5, kind: input, shape index: {}]   ;;  %s482_s6 = inlined_call_operand.hbm [shape: f32[8,128], index: 6, kind: output, shape index: {}]  }
   0x1   :  { %12 = vsyncpa [#allocation7], 0 }
   0x2   :  { %13 = vsyncpa [#allocation5], 0  ;;  %s26_s23 = sshll.u32 %s480_s4, 4  ;;  %s392_s24 = smov [#allocation3]   ;;  %s27_s23 = int_to_ptr.hbm [resolvable:$true] %s26_s23 }
   0x3   :  { %s28_s25 = sshll.u32 %s392_s24, 4  ;;  %s39_s28 = sshll.u32 %s481_s5, 4  ;;  %s29_s25 = int_to_ptr.vmem [resolvable:$true] %s28_s25  ;;  %s40_s28 = int_to_ptr.hbm [resolvable:$true] %s39_s28 }
   0x4   :  { %s393_s29 = smov 128   ;;  %s394_s30 = smov 8  }
   0x5   :  { %34 = dma.hbm_to_vmem [thread:$0]  %s27_s23, 2048, %s29_s25, [#allocation4], %s393_s29, %s393_s29, %s394_s30  }
   0x6   :  { %s395_s7 = smov [#allocation6]  }
   0x7   :  { %s41_s8 = sshll.u32 %s395_s7, 4  ;;  %s42_s8 = int_to_ptr.vmem [resolvable:$true] %s41_s8 }
   0x8   :  { %47 = dma.hbm_to_vmem [thread:$0]  %s40_s28, 2048, %s42_s8, [#allocation7], %s393_s29, %s393_s29, %s394_s30  }
   0x9   :  { %386 = dma.done.wait [#allocation4], 2048  }
   0xa   :  { %387 = vsyncadd [#allocation4], 4294965248 }
   0xb   :  { %388 = dma.done.wait [#allocation7], 2048  }
   0xc   :  { %389 = vsyncadd [#allocation7], 4294965248  ;;  %v304_v0 = vld [vmem:[%s477_s1 + $0x38] sm:$0xff]  ;;  %v303_v1 = vld [vmem:[%s477_s1 + $0x30] sm:$0xff]  ;;  %v396_v2 = vmov 0   ;;  %v84_v26 = vlaneseq  ;;  %s249_s30 = sshll.u32 %s482_s6, 4  ;;  %s250_s30 = int_to_ptr.hbm [resolvable:$true] %s249_s30 }
   0xd   :  { %142 = vmatpush.bf16.msra.mxu0 %v304_v0  ;;  %312 = vset.pattern.permute.xlu0 %v396_v2  ;;  %v161_v3 = vld [vmem:[%s479_s3] sm:$0xff]  ;;  %v184_v4 = vld [vmem:[#allocation3 + $0x78] sm:$0xff]  ;;  %v183_v5 = vld [vmem:[#allocation3 + $0x70] sm:$0xff]  ;;  %v397_v45 = vmov 1.0|1.0  }
   0xe   :  { %164 = vperm.xlu0 %312, %v161_v3   ;;  %221 = vmatpush.msra.mxu2 %v184_v4  ;;  %v200_v6 = vld [vmem:[#allocation6 + $0x78] sm:$0xff]  ;;  %v182_v7 = vld [vmem:[#allocation3 + $0x68] sm:$0xff]  ;;  %v199_v8 = vld [vmem:[#allocation6 + $0x70] sm:$0xff]  ;;  %v85_v32 = vshrl.u32 %v84_v26, 7 }
   0xf   :  { %201 = vmatpush.msra.mxu1 %v200_v6  ;;  %v302_v9 = vld [vmem:[%s477_s1 + $0x28] sm:$0xff]  ;;  %v181_v11 = vld [vmem:[#allocation3 + $0x60] sm:$0xff]  ;;  %v180_v13 = vld [vmem:[#allocation3 + $0x58] sm:$0xff] }
  0x10   :  { %222 = vmatpush.msra.mxu2 %v183_v5  ;;  %v198_v10 = vld [vmem:[#allocation6 + $0x68] sm:$0xff]  ;;  %v197_v12 = vld [vmem:[#allocation6 + $0x60] sm:$0xff]  ;;  %v196_v15 = vld [vmem:[#allocation6 + $0x58] sm:$0xff] }
  0x11   :  { %143 = vmatpush.bf16.msra.mxu0 %v303_v1  ;;  %202 = vmatpush.msra.mxu1 %v199_v8  ;;  %v301_v14 = vld [vmem:[%s477_s1 + $0x20] sm:$0xff]  ;;  %v179_v16 = vld [vmem:[#allocation3 + $0x50] sm:$0xff]  ;;  %v178_v18 = vld [vmem:[#allocation3 + $0x48] sm:$0xff] }
  0x12   :  { %223 = vmatpush.msra.mxu2 %v182_v7  ;;  %v195_v17 = vld [vmem:[#allocation6 + $0x50] sm:$0xff]  ;;  %v300_v19 = vld [vmem:[%s477_s1 + $0x18] sm:$0xff]  ;;  %v194_v20 = vld [vmem:[#allocation6 + $0x48] sm:$0xff] }
  0x13   :  { %203 = vmatpush.msra.mxu1 %v198_v10  ;;  %v177_v21 = vld [vmem:[#allocation3 + $0x40] sm:$0xff]  ;;  %v176_v23 = vld [vmem:[#allocation3 + $0x38] sm:$0xff]  ;;  %v299_v24 = vld [vmem:[%s477_s1 + $0x10] sm:$0xff] }
  0x14   :  { %224 = vmatpush.msra.mxu2 %v181_v11  ;;  %v193_v22 = vld [vmem:[#allocation6 + $0x40] sm:$0xff]  ;;  %v192_v25 = vld [vmem:[#allocation6 + $0x38] sm:$0xff]  ;;  %v175_v27 = vld [vmem:[#allocation3 + $0x30] sm:$0xff] }
  0x15   :  { %144 = vmatpush.bf16.msra.mxu0 %v302_v9  ;;  %204 = vmatpush.msra.mxu1 %v197_v12  ;;  %v191_v28 = vld [vmem:[#allocation6 + $0x30] sm:$0xff]  ;;  %v174_v29 = vld [vmem:[#allocation3 + $0x28] sm:$0xff]  ;;  %v313_v33 = vld [vmem:[%s476_s0] ss:$0 sm:$0xff] }
  0x16   :  { %225 = vmatpush.msra.mxu2 %v180_v13  ;;  %v298_v30 = vld [vmem:[%s477_s1 + $0x8] sm:$0xff]  ;;  %v173_v34 = vld [vmem:[#allocation3 + $0x20] sm:$0xff]  ;;  %v172_v36 = vld [vmem:[#allocation3 + $0x18] sm:$0xff]  ;;  %vm89_vm0 = vcmp.eq.s32.totalorder %v85_v32, %v313_v33 }
  0x17   :  { %205 = vmatpush.msra.mxu1 %v196_v15  ;;  %v190_v31 = vld [vmem:[#allocation6 + $0x28] sm:$0xff]  ;;  %v189_v35 = vld [vmem:[#allocation6 + $0x20] sm:$0xff]  ;;  %v188_v38 = vld [vmem:[#allocation6 + $0x18] sm:$0xff] }
  0x18   :  { %226 = vmatpush.msra.mxu2 %v179_v16  ;;  %v297_v37 = vld [vmem:[%s477_s1] sm:$0xff]  ;;  %v171_v39 = vld [vmem:[#allocation3 + $0x10] sm:$0xff]  ;;  %v170_v41 = vld [vmem:[#allocation3 + $0x8] sm:$0xff]  ;;  %s398_s1 = smov [#allocation8]  }
  0x19   :  { %145 = vmatpush.bf16.msra.mxu0 %v301_v14  ;;  %206 = vmatpush.msra.mxu1 %v195_v17  ;;  %v187_v40 = vld [vmem:[#allocation6 + $0x10] sm:$0xff]  ;;  %vm295_vm1 = vmpackc.low %vm89_vm0, %vm89_vm0  ;;  %v186_v42 = vld [vmem:[#allocation6 + $0x8] sm:$0xff]  ;;  %s247_s27 = sshll.u32 %s398_s1, 4  ;;  %s248_s27 = int_to_ptr.vmem [resolvable:$true] %s247_s27 }
  0x1a   :  { %227 = vmatpush.msra.mxu2 %v178_v18  ;;  %v169_v43 = vld [vmem:[#allocation3] sm:$0xff] }
  0x1b   :  { %207 = vmatpush.msra.mxu1 %v194_v20  ;;  %v168_v44 = vld [vmem:[%s478_s2] sm:$0xff] }
  0x1c   :  { %228 = vmatpush.msra.mxu2 %v177_v21  ;;  %v185_v46 = vld [vmem:[#allocation6] sm:$0xff] }
  0x1d   :  { %146 = vmatpush.bf16.msra.mxu0 %v300_v19  ;;  %208 = vmatpush.msra.mxu1 %v193_v22 }
  0x1e   :  { %229 = vmatpush.msra.mxu2 %v176_v23 }
  0x1f   :  { %209 = vmatpush.msra.mxu1 %v192_v25 }
  0x20   :  { %230 = vmatpush.msra.mxu2 %v175_v27 }
  0x21   :  { %147 = vmatpush.bf16.msra.mxu0 %v299_v24  ;;  %210 = vmatpush.msra.mxu1 %v191_v28 }
  0x22   :  { %231 = vmatpush.msra.mxu2 %v174_v29 }
  0x23   :  { %211 = vmatpush.msra.mxu1 %v190_v31 }
  0x24   :  { %232 = vmatpush.msra.mxu2 %v173_v34 }
  0x25   :  { %148 = vmatpush.bf16.msra.mxu0 %v298_v30  ;;  %212 = vmatpush.msra.mxu1 %v189_v35 }
  0x26   :  { %233 = vmatpush.msra.mxu2 %v172_v36 }
  0x27   :  { %213 = vmatpush.msra.mxu1 %v188_v38 }
  0x28   :  { %234 = vmatpush.msra.mxu2 %v171_v39 }
  0x29   :  { %149 = vmatpush.bf16.msra.mxu0 %v297_v37  ;;  %214 = vmatpush.msra.mxu1 %v187_v40 }
  0x2a   :  { %235 = vmatpush.msra.mxu2 %v170_v41 }
  0x2b   :  { %215 = vmatpush.msra.mxu1 %v186_v42 }
  0x2c   :  { %296 = vmatmul.msk.bf16.vlgmr.msra.gmra.mxu0 %vm295_vm1, %v397_v45  ;;  %236 = vmatpush.msra.mxu2 %v169_v43 }
  0x2d   :  { %237 = vmatmul.f32.vlgmr.msra.gmra.mxu2 %v168_v44  ;;  %216 = vmatpush.msra.mxu1 %v185_v46 }
  0x80   :  { %v165_v47 = vpop.permute.xlu0 %164 }
  0xa9   :  { %v151_v48 = vpop.f32.mrf.mxu0 }
  0xaa   :  { %v167_v49 = vmul.f32 %v165_v47, %v151_v48 }
  0xac   :  { %217 = vmatmul.f32.vlgmr.msra.gmra.mxu1 %v167_v49 }
  0xb0   :  { %v238_v51 = vpop.f32.mrf.mxu2 }
  0xb1   :  { %v153_v50 = vpop.f32.mrf.mxu0 }
 0x129   :  { %v218_v52 = vpop.f32.mrf.mxu1 }
 0x12a   :  { %v239_v53 = vadd.f32 %v238_v51, %v218_v52 }
 0x12c   :  { %241 = vst [vmem:[#allocation8] sm:$0xff] %v239_v53 }
 0x12d   :  { %252 = dma.vmem_to_hbm [thread:$0]  %s248_s27, 128, %s250_s30, [#allocation5]  }
 0x12e   :  { %390 = dma.done.wait [#allocation5], 128  }
 0x12f   :  { %391 = vsyncadd [#allocation5], 4294967168 }
 0x130   :  { %257 = vsyncpa [#allocation4], 1 }
 0x131   :  { %258 = vsyncpa [#allocation7], 1 }
 0x132   :  { %259 = vsyncpa [#allocation5], 1 }

</bundles_post_ra>
